<compile_context>
chip_gen: v6e
topology: v6e:2x2x1
jax: 0.10.0
libtpu: 0.0.40
codegen_flags: <defaults>
</compile_context>

<pallas_src>
import jax
import jax.numpy as jnp
from jax.experimental import pallas as pl
from jax.experimental.pallas import tpu as pltpu

LANE = 128   # lane width of a vreg / MXU column tile
TB = 128     # batch rows per grid step


def _round_up(n, m):
    return ((n + m - 1) // m) * m


def _pad_to(a, shape):
    return jnp.pad(a, [(0, t - s) for s, t in zip(a.shape, shape)])


def mlp_kernel(x_ref, w_ref, b_ref, o_ref):
    # x_ref: (TB, D); w_ref: (4, D, D); b_ref: (4, D); o_ref: (TB, D)
    b = b_ref[...]                         # single lane-dense bias slab load
    h = jnp.dot(x_ref[...], w_ref[0], preferred_element_type=jnp.float32)
    h = jnp.maximum(h + b[0:1, :], 0.0)
    h = jnp.dot(h, w_ref[1], preferred_element_type=jnp.float32)
    h = jnp.maximum(h + b[1:2, :], 0.0)
    h = jnp.dot(h, w_ref[2], preferred_element_type=jnp.float32)
    h = jnp.maximum(h + b[2:3, :], 0.0)
    o = jnp.dot(h, w_ref[3], preferred_element_type=jnp.float32)
    o_ref[...] = (o + b[3:4, :]).astype(o_ref.dtype)


def net_forward(x, params, *, tb=TB):
    """y = relu(relu(relu(x@W1+b1)@W2+b2)@W3+b3)@W4+b4, lane-dense & tiled."""
    B, F = x.shape
    w = [params[f"w{i}"] for i in range(1, 5)]
    b = [params[f"b{i}"] for i in range(1, 5)]
    n_output = w[3].shape[1]

    Fp = _round_up(F, LANE)
    Dp = [_round_up(wi.shape[1], LANE) for wi in w]
    # Packing all weights/biases into one slab needs equal padded widths
    # (all 128 for this Net: 2, 32, 32, 32, 4 -> 128).
    assert len(set(Dp)) == 1 and Fp == Dp[0], \
        "weight/bias slabs require equal padded layer widths"
    D = Dp[0]

    Bp = _round_up(B, tb)

    # Zero-pad: padded lanes carry exact zeros through every layer.
    xp = _pad_to(x, (Bp, D))
    wp = jnp.stack([_pad_to(wi, (D, D)) for wi in w], axis=0)          # (4, D, D)
    bp = jnp.concatenate([_pad_to(bi, (1, D)) for bi in b], axis=0)    # (4, D)

    grid = (Bp // tb,)
    x_spec = pl.BlockSpec((tb, D), lambda i: (i, 0))
    w_spec = pl.BlockSpec((4, D, D), lambda i: (0, 0, 0))   # resident in VMEM
    b_spec = pl.BlockSpec((4, D), lambda i: (0, 0))         # resident in VMEM
    o_spec = pl.BlockSpec((tb, D), lambda i: (i, 0))

    out = pl.pallas_call(
        mlp_kernel,
        out_shape=jax.ShapeDtypeStruct((Bp, D), jnp.float32),
        grid_spec=pltpu.PrefetchScalarGridSpec(
            num_scalar_prefetch=0,
            grid=grid,
            in_specs=[x_spec, w_spec, b_spec],
            out_specs=o_spec,
        ),
        compiler_params=pltpu.CompilerParams(
            dimension_semantics=("parallel",)),
    )(xp, wp, bp)
    return out[:B, :n_output]


def init_params(key, n_feature, n_hidden, n_hidden1, n_hidden2, n_output):
    """Mimics torch.nn.Linear default init (uniform +-1/sqrt(fan_in)).

    Weights stored pre-transposed as (in_features, out_features); biases as
    (1, out_features). Padding to TPU-friendly shapes happens in net_forward.
    """
    dims = [(n_feature, n_hidden), (n_hidden, n_hidden1),
            (n_hidden1, n_hidden2), (n_hidden2, n_output)]
    params = {}
    for i, (fan_in, fan_out) in enumerate(dims, start=1):
        key, kw, kb = jax.random.split(key, 3)
        bound = 1.0 / jnp.sqrt(jnp.float32(fan_in))
        params[f"w{i}"] = jax.random.uniform(
            kw, (fan_in, fan_out), jnp.float32, -bound, bound)
        params[f"b{i}"] = jax.random.uniform(
            kb, (1, fan_out), jnp.float32, -bound, bound)
    return params


def net_forward_ref(x, params):
    h = jnp.maximum(x @ params["w1"] + params["b1"], 0.0)
    h = jnp.maximum(h @ params["w2"] + params["b2"], 0.0)
    h = jnp.maximum(h @ params["w3"] + params["b3"], 0.0)
    return h @ params["w4"] + params["b4"]


if __name__ == "__main__":
    key = jax.random.PRNGKey(0)
    key, kdata = jax.random.split(key)

    # Small shapes consistent with the module: 2-D points, 4-way classification.
    batch, n_feature = 16, 2
    n_hidden, n_hidden1, n_hidden2, n_output = 32, 32, 32, 4

    # Synthetic input analogous to the script's Gaussian clusters around +-2.
    x = 2.0 * jnp.ones((batch, n_feature), jnp.float32) \
        + jax.random.normal(kdata, (batch, n_feature), jnp.float32)

    params = init_params(key, n_feature, n_hidden, n_hidden1, n_hidden2, n_output)

    out = net_forward(x, params)
    out = jax.block_until_ready(out)

    # Correctness check against a pure-JAX reference (unpadded math).
    ref = net_forward_ref(x, params)
    assert out.shape == (batch, n_output)
    assert jnp.allclose(out, ref, atol=1e-5, rtol=1e-5)

    print("KERNEL_OK")
</pallas_src>

<mosaic_0001>
module attributes {stable_mosaic.version = 11 : i64} {
  func.func @mlp_kernel(%arg0: i32, %arg1: memref<128x128xf32, #tpu.memory_space<vmem>>, %arg2: memref<4x128x128xf32, #tpu.memory_space<vmem>>, %arg3: memref<4x128xf32, #tpu.memory_space<vmem>>, %arg4: memref<128x128xf32, #tpu.memory_space<vmem>>) attributes {dimension_semantics = [#tpu.dimension_semantics<parallel>], iteration_bounds = array<i64: 1>, scalar_prefetch = 0 : i64, scratch_operands = 0 : i64, tpu.core_type = #tpu.core_type<tc>, window_params = [{transform_indices = @transform_0, window_bounds = array<i64: 128, 128>}, {pipeline_mode = #tpu.pipeline_mode<synchronous>, transform_indices = @transform_1, window_bounds = array<i64: 4, 128, 128>}, {pipeline_mode = #tpu.pipeline_mode<synchronous>, transform_indices = @transform_2, window_bounds = array<i64: 4, 128>}, {transform_indices = @transform_3, window_bounds = array<i64: 128, 128>}]} {
    %c0 = arith.constant 0 : index
    %c0_0 = arith.constant 0 : index
    %0 = vector.load %arg3[%c0, %c0_0] : memref<4x128xf32, #tpu.memory_space<vmem>>, vector<4x128xf32>
    %c0_1 = arith.constant 0 : index
    %c0_2 = arith.constant 0 : index
    %1 = vector.load %arg1[%c0_1, %c0_2] : memref<128x128xf32, #tpu.memory_space<vmem>>, vector<128x128xf32>
    %c0_3 = arith.constant 0 : index
    %c0_4 = arith.constant 0 : index
    %c0_5 = arith.constant 0 : index
    %2 = vector.load %arg2[%c0_3, %c0_4, %c0_5] : memref<4x128x128xf32, #tpu.memory_space<vmem>>, vector<1x128x128xf32>
    %3 = vector.shape_cast %2 : vector<1x128x128xf32> to vector<128x128xf32>
    %cst = arith.constant dense<0.000000e+00> : vector<128x128xf32>
    %4 = tpu.matmul %1, %3, %cst {dimension_numbers = #tpu.dot_dimension_numbers<[1], [0], [0], [1], [0, 0, 1, 1], [], []>} : vector<128x128xf32>, vector<128x128xf32>, vector<128x128xf32> -> vector<128x128xf32>
    %5 = vector.extract_strided_slice %0 {offsets = [0, 0], sizes = [1, 128], strides = [1, 1]} : vector<4x128xf32> to vector<1x128xf32>
    %6 = vector.broadcast %5 : vector<1x128xf32> to vector<128x128xf32>
    %7 = arith.addf %4, %6 : vector<128x128xf32>
    %cst_6 = arith.constant 0.000000e+00 : f32
    %8 = vector.broadcast %cst_6 : f32 to vector<128x128xf32>
    %9 = arith.maximumf %7, %8 : vector<128x128xf32>
    %c1 = arith.constant 1 : index
    %c0_7 = arith.constant 0 : index
    %c0_8 = arith.constant 0 : index
    %10 = vector.load %arg2[%c1, %c0_7, %c0_8] : memref<4x128x128xf32, #tpu.memory_space<vmem>>, vector<1x128x128xf32>
    %11 = vector.shape_cast %10 : vector<1x128x128xf32> to vector<128x128xf32>
    %cst_9 = arith.constant dense<0.000000e+00> : vector<128x128xf32>
    %12 = tpu.matmul %9, %11, %cst_9 {dimension_numbers = #tpu.dot_dimension_numbers<[1], [0], [0], [1], [0, 0, 1, 1], [], []>} : vector<128x128xf32>, vector<128x128xf32>, vector<128x128xf32> -> vector<128x128xf32>
    %13 = vector.extract_strided_slice %0 {offsets = [1, 0], sizes = [1, 128], strides = [1, 1]} : vector<4x128xf32> to vector<1x128xf32>
    %14 = vector.broadcast %13 : vector<1x128xf32> to vector<128x128xf32>
    %15 = arith.addf %12, %14 : vector<128x128xf32>
    %cst_10 = arith.constant 0.000000e+00 : f32
    %16 = vector.broadcast %cst_10 : f32 to vector<128x128xf32>
    %17 = arith.maximumf %15, %16 : vector<128x128xf32>
    %c2 = arith.constant 2 : index
    %c0_11 = arith.constant 0 : index
    %c0_12 = arith.constant 0 : index
    %18 = vector.load %arg2[%c2, %c0_11, %c0_12] : memref<4x128x128xf32, #tpu.memory_space<vmem>>, vector<1x128x128xf32>
    %19 = vector.shape_cast %18 : vector<1x128x128xf32> to vector<128x128xf32>
    %cst_13 = arith.constant dense<0.000000e+00> : vector<128x128xf32>
    %20 = tpu.matmul %17, %19, %cst_13 {dimension_numbers = #tpu.dot_dimension_numbers<[1], [0], [0], [1], [0, 0, 1, 1], [], []>} : vector<128x128xf32>, vector<128x128xf32>, vector<128x128xf32> -> vector<128x128xf32>
    %21 = vector.extract_strided_slice %0 {offsets = [2, 0], sizes = [1, 128], strides = [1, 1]} : vector<4x128xf32> to vector<1x128xf32>
    %22 = vector.broadcast %21 : vector<1x128xf32> to vector<128x128xf32>
    %23 = arith.addf %20, %22 : vector<128x128xf32>
    %cst_14 = arith.constant 0.000000e+00 : f32
    %24 = vector.broadcast %cst_14 : f32 to vector<128x128xf32>
    %25 = arith.maximumf %23, %24 : vector<128x128xf32>
    %c3 = arith.constant 3 : index
    %c0_15 = arith.constant 0 : index
    %c0_16 = arith.constant 0 : index
    %26 = vector.load %arg2[%c3, %c0_15, %c0_16] : memref<4x128x128xf32, #tpu.memory_space<vmem>>, vector<1x128x128xf32>
    %27 = vector.shape_cast %26 : vector<1x128x128xf32> to vector<128x128xf32>
    %cst_17 = arith.constant dense<0.000000e+00> : vector<128x128xf32>
    %28 = tpu.matmul %25, %27, %cst_17 {dimension_numbers = #tpu.dot_dimension_numbers<[1], [0], [0], [1], [0, 0, 1, 1], [], []>} : vector<128x128xf32>, vector<128x128xf32>, vector<128x128xf32> -> vector<128x128xf32>
    %29 = vector.extract_strided_slice %0 {offsets = [3, 0], sizes = [1, 128], strides = [1, 1]} : vector<4x128xf32> to vector<1x128xf32>
    %30 = vector.broadcast %29 : vector<1x128xf32> to vector<128x128xf32>
    %31 = arith.addf %28, %30 : vector<128x128xf32>
    %c0_18 = arith.constant 0 : index
    %c0_19 = arith.constant 0 : index
    %32 = vector.load %arg4[%c0_18, %c0_19] : memref<128x128xf32, #tpu.memory_space<vmem>>, vector<128x128xf32>
    tpu.vector_store %arg4[%c0_18, %c0_19], %31 {strides = array<i32>} : memref<128x128xf32, #tpu.memory_space<vmem>>, vector<128x128xf32>,
    return
  }
  func.func @transform_0(%arg0: i32) -> (i32, i32) {
    %c0_i32 = arith.constant 0 : i32
    %c0_i32_0 = arith.constant 0 : i32
    return %arg0, %c0_i32 : i32, i32
  }
  func.func @transform_1(%arg0: i32) -> (i32, i32, i32) {
    %c0_i32 = arith.constant 0 : i32
    %c0_i32_0 = arith.constant 0 : i32
    %c0_i32_1 = arith.constant 0 : i32
    %c0_i32_2 = arith.constant 0 : i32
    return %c0_i32, %c0_i32_0, %c0_i32_1 : i32, i32, i32
  }
  func.func @transform_2(%arg0: i32) -> (i32, i32) {
    %c0_i32 = arith.constant 0 : i32
    %c0_i32_0 = arith.constant 0 : i32
    %c0_i32_1 = arith.constant 0 : i32
    return %c0_i32, %c0_i32_0 : i32, i32
  }
  func.func @transform_3(%arg0: i32) -> (i32, i32) {
    %c0_i32 = arith.constant 0 : i32
    %c0_i32_0 = arith.constant 0 : i32
    return %arg0, %c0_i32 : i32, i32
  }
}

</mosaic_0001>

<bundles_post_ra>
// kernel: tpu_custom_call.1
= control target key start
LH: loop header
LB: loop body
LE: loop exit
PB: predicated region body
PF: predicated region fallthrough
CT: control target
= control target key end

     0   :  { %8 = vsyncpa [#allocation3], 0  ;;  %s1319_s0 = inlined_call_operand.hbm [shape: f32[128,128], index: 0, kind: input, shape index: {}]   ;;  %s1320_s1 = inlined_call_operand.hbm [shape: f32[4,128,128], index: 1, kind: input, shape index: {}]   ;;  %s1321_s2 = inlined_call_operand.hbm [shape: f32[4,128], index: 2, kind: input, shape index: {}]   ;;  %s1322_s3 = inlined_call_operand.hbm [shape: f32[128,128], index: 3, kind: output, shape index: {}]  }
   0x1   :  { %9 = vsyncpa [#allocation6], 0 }
   0x2   :  { %10 = vsyncpa [#allocation4], 0  ;;  %s1260_s12 = smov [#allocation5]   ;;  %s1261_s14 = smov [#allocation2]  }
   0x3   :  { %s28_s13 = sshll.u32 %s1260_s12, 4  ;;  %s16_s15 = sshll.u32 %s1261_s14, 4  ;;  %s29_s13 = int_to_ptr.vmem [resolvable:$true] %s28_s13  ;;  %s17_s15 = int_to_ptr.vmem [resolvable:$true] %s16_s15 }
   0x4   :  { %s1182_s16 = scalar_lea.vmem %s29_s13, 8192  ;;  %p1187_p1 = scmp.lt.s32.totalorder %s29_s13, %s29_s13 }
   0x5   :  { %p1183_p0 = scmp.ne.s32.totalorder %s29_s13, %s1182_s16  ;;  %p1188_p2 = scmp.lt.s32.totalorder %s1182_s16, %s1182_s16 }
   0x7   :  { %p1189_p3 = por %p1188_p2, %p1187_p1 }
   0x9   :  { %p1190_p4 = pnand %p1189_p3, %p1183_p0 }
   0xb   :  { %1193 = shalt.err (!%p1190_p4)
}
   0xc   :  { %s1262_s17 = smov 128   ;;  %s1263_s18 = smov 8  }
   0xd   :  { %34 = dma.hbm_to_vmem [thread:$0]  %s1320_s1, 8192, %s29_s13, [#allocation6], %s1262_s17, %s1262_s17, %s1263_s18  }
   0xe   :  { %s1202_s21 = scalar_lea.vmem %s17_s15, 2048  ;;  %p1207_p6 = scmp.lt.s32.totalorder %s17_s15, %s17_s15 }
   0xf   :  { %p1203_p5 = scmp.ne.s32.totalorder %s17_s15, %s1202_s21  ;;  %p1208_p7 = scmp.lt.s32.totalorder %s1202_s21, %s1202_s21 }
  0x11   :  { %p1209_p8 = por %p1208_p7, %p1207_p6 }
  0x13   :  { %p1210_p9 = pnand %p1209_p8, %p1203_p5 }
  0x15   :  { %1213 = shalt.err (!%p1210_p9)
}
  0x16   :  { %22 = dma.hbm_to_vmem [thread:$0]  %s1319_s0, 2048, %s17_s15, [#allocation3], %s1262_s17, %s1262_s17, %s1263_s18  }
  0x17   :  { %s1264_s24 = smov [#allocation7]  }
  0x18   :  { %s41_s25 = sshll.u32 %s1264_s24, 4  ;;  %s42_s25 = int_to_ptr.vmem [resolvable:$true] %s41_s25 }
  0x19   :  { %s1222_s26 = scalar_lea.vmem %s42_s25, 64  ;;  %p1227_p11 = scmp.lt.s32.totalorder %s42_s25, %s42_s25 }
  0x1a   :  { %p1223_p10 = scmp.ne.s32.totalorder %s42_s25, %s1222_s26  ;;  %p1228_p12 = scmp.lt.s32.totalorder %s1222_s26, %s1222_s26 }
  0x1c   :  { %p1229_p13 = por %p1228_p12, %p1227_p11 }
  0x1e   :  { %p1230_p0 = pnand %p1229_p13, %p1223_p10 }
  0x20   :  { %1233 = shalt.err (!%p1230_p0)
}
  0x21   :  { %44 = dma.hbm_to_vmem [thread:$0]  %s1321_s2, 64, %s42_s25, [#allocation6]  }
  0x22   :  { %1254 = dma.done.wait [#allocation3], 2048  }
  0x23   :  { %1255 = vsyncadd [#allocation3], 4294965248 }
  0x24   :  { %1256 = dma.done.wait [#allocation6], 8256  }
  0x25   :  { %1257 = vsyncadd [#allocation6], 4294959040  ;;  %v86_v0 = vld [vmem:[#allocation5 + $0x78] sm:$0xff]  ;;  %v85_v1 = vld [vmem:[#allocation5 + $0x70] sm:$0xff]  ;;  %v87_v61 = vlaneseq  ;;  %s1265_s0 = smov [#allocation8]  }
  0x26   :  { %944 = vmatprep.subr.mxu0 %v86_v0  ;;  %v84_v2 = vld [vmem:[#allocation5 + $0x68] sm:$0xff]  ;;  %v83_v3 = vld [vmem:[#allocation5 + $0x60] sm:$0xff]  ;;  %v82_v5 = vld [vmem:[#allocation5 + $0x58] sm:$0xff]  ;;  %s803_s2 = sshll.u32 %s1265_s0, 4  ;;  %s804_s2 = int_to_ptr.vmem [resolvable:$true] %s803_s2 }
  0x27   :  { %945 = vmatpush3.msra.mxu0 %v86_v0  ;;  %v55_v4 = vld [vmem:[#allocation2] sm:$0xff]  ;;  %v81_v6 = vld [vmem:[#allocation5 + $0x50] sm:$0xff]  ;;  %v80_v7 = vld [vmem:[#allocation5 + $0x48] sm:$0xff]  ;;  %v1301_v62 = vshrl.u32 %v87_v61, 7  ;;  %s1234_s28 = scalar_lea.vmem %s804_s2, 2048  ;;  %p1239_p2 = scmp.lt.s32.totalorder %s804_s2, %s804_s2 }
  0x28   :  { %946 = vmatprep.subr.mxu0 %v85_v1  ;;  %976 = vmatprep.mubr.f32.mxu0 %v55_v4  ;;  %v268_v8 = vld [vmem:[#allocation5 + $0xf8] sm:$0xff]  ;;  %v267_v9 = vld [vmem:[#allocation5 + $0xf0] sm:$0xff]  ;;  %v79_v10 = vld [vmem:[#allocation5 + $0x40] sm:$0xff]  ;;  %p1235_p1 = scmp.ne.s32.totalorder %s804_s2, %s1234_s28  ;;  %p1240_p3 = scmp.lt.s32.totalorder %s1234_s28, %s1234_s28 }
  0x29   :  { %947 = vmatpush3.msra.mxu0 %v85_v1  ;;  %1000 = vmatprep.subr.mxu1 %v268_v8  ;;  %v266_v11 = vld [vmem:[#allocation5 + $0xe8] sm:$0xff]  ;;  %v78_v12 = vld [vmem:[#allocation5 + $0x38] sm:$0xff]  ;;  %v265_v13 = vld [vmem:[#allocation5 + $0xe0] sm:$0xff]  ;;  %v89_v63 = vsub.s32 0, %v1301_v62 }
  0x2a   :  { %948 = vmatprep.subr.mxu0 %v84_v2  ;;  %1001 = vmatpush3.msra.mxu1 %v268_v8  ;;  %v77_v14 = vld [vmem:[#allocation5 + $0x30] sm:$0xff]  ;;  %v264_v15 = vld [vmem:[#allocation5 + $0xd8] sm:$0xff]  ;;  %v76_v16 = vld [vmem:[#allocation5 + $0x28] sm:$0xff]  ;;  %p1241_p4 = por %p1240_p3, %p1239_p2 }
  0x2b   :  { %949 = vmatpush3.msra.mxu0 %v84_v2  ;;  %1002 = vmatprep.subr.mxu1 %v267_v9  ;;  %v263_v17 = vld [vmem:[#allocation5 + $0xd0] sm:$0xff]  ;;  %v75_v18 = vld [vmem:[#allocation5 + $0x20] sm:$0xff]  ;;  %v262_v19 = vld [vmem:[#allocation5 + $0xc8] sm:$0xff] }
  0x2c   :  { %950 = vmatprep.subr.mxu0 %v83_v3  ;;  %1003 = vmatpush3.msra.mxu1 %v267_v9  ;;  %v74_v20 = vld [vmem:[#allocation5 + $0x18] sm:$0xff]  ;;  %v261_v21 = vld [vmem:[#allocation5 + $0xc0] sm:$0xff]  ;;  %v73_v22 = vld [vmem:[#allocation5 + $0x10] sm:$0xff]  ;;  %p1242_p5 = pnand %p1241_p4, %p1235_p1 }
  0x2d   :  { %951 = vmatpush3.msra.mxu0 %v83_v3  ;;  %1004 = vmatprep.subr.mxu1 %v266_v11  ;;  %v260_v23 = vld [vmem:[#allocation5 + $0xb8] sm:$0xff]  ;;  %v72_v24 = vld [vmem:[#allocation5 + $0x8] sm:$0xff]  ;;  %v259_v25 = vld [vmem:[#allocation5 + $0xb0] sm:$0xff] }
  0x2e   :  { %952 = vmatprep.subr.mxu0 %v82_v5  ;;  %1005 = vmatpush3.msra.mxu1 %v266_v11  ;;  %v71_v26 = vld [vmem:[#allocation5] sm:$0xff]  ;;  %v258_v27 = vld [vmem:[#allocation5 + $0xa8] sm:$0xff]  ;;  %v57_v30 = vld [vmem:[#allocation2 + $0x10] sm:$0xff] }
  0x2f   :  { %953 = vmatpush3.msra.mxu0 %v82_v5  ;;  %1006 = vmatprep.subr.mxu1 %v265_v13  ;;  %v56_v28 = vld [vmem:[#allocation2 + $0x8] sm:$0xff]  ;;  %v257_v29 = vld [vmem:[#allocation5 + $0xa0] sm:$0xff]  ;;  %v58_v31 = vld [vmem:[#allocation2 + $0x18] sm:$0xff] }
  0x30   :  { %954 = vmatprep.subr.mxu0 %v81_v6  ;;  %1007 = vmatpush3.msra.mxu1 %v265_v13  ;;  %v59_v32 = vld [vmem:[#allocation2 + $0x20] sm:$0xff]  ;;  %v60_v33 = vld [vmem:[#allocation2 + $0x28] sm:$0xff]  ;;  %v61_v34 = vld [vmem:[#allocation2 + $0x30] sm:$0xff] }
  0x31   :  { %955 = vmatpush3.msra.mxu0 %v81_v6  ;;  %1008 = vmatprep.subr.mxu1 %v264_v15  ;;  %v62_v35 = vld [vmem:[#allocation2 + $0x38] sm:$0xff]  ;;  %v63_v36 = vld [vmem:[#allocation2 + $0x40] sm:$0xff]  ;;  %v64_v37 = vld [vmem:[#allocation2 + $0x48] sm:$0xff] }
  0x32   :  { %956 = vmatprep.subr.mxu0 %v80_v7  ;;  %1009 = vmatpush3.msra.mxu1 %v264_v15  ;;  %v65_v38 = vld [vmem:[#allocation2 + $0x50] sm:$0xff]  ;;  %v66_v39 = vld [vmem:[#allocation2 + $0x58] sm:$0xff]  ;;  %v67_v40 = vld [vmem:[#allocation2 + $0x60] sm:$0xff] }
  0x33   :  { %957 = vmatpush3.msra.mxu0 %v80_v7  ;;  %1010 = vmatprep.subr.mxu1 %v263_v17  ;;  %v68_v41 = vld [vmem:[#allocation2 + $0x68] sm:$0xff]  ;;  %v69_v42 = vld [vmem:[#allocation2 + $0x70] sm:$0xff]  ;;  %v70_v43 = vld [vmem:[#allocation2 + $0x78] sm:$0xff] }
  0x34   :  { %958 = vmatprep.subr.mxu0 %v79_v10  ;;  %1011 = vmatpush3.msra.mxu1 %v263_v17  ;;  %v256_v44 = vld [vmem:[#allocation5 + $0x98] sm:$0xff]  ;;  %v255_v45 = vld [vmem:[#allocation5 + $0x90] sm:$0xff]  ;;  %v254_v46 = vld [vmem:[#allocation5 + $0x88] sm:$0xff] }
  0x35   :  { %959 = vmatpush3.msra.mxu0 %v79_v10  ;;  %1012 = vmatprep.subr.mxu1 %v262_v19  ;;  %v253_v47 = vld [vmem:[#allocation5 + $0x80] sm:$0xff]  ;;  %v450_v48 = vld [vmem:[#allocation5 + $0x178] sm:$0xff]  ;;  %v449_v49 = vld [vmem:[#allocation5 + $0x170] sm:$0xff] }
  0x36   :  { %960 = vmatprep.subr.mxu0 %v78_v12  ;;  %1013 = vmatpush3.msra.mxu1 %v262_v19  ;;  %v448_v50 = vld [vmem:[#allocation5 + $0x168] sm:$0xff]  ;;  %v447_v51 = vld [vmem:[#allocation5 + $0x160] sm:$0xff]  ;;  %v446_v52 = vld [vmem:[#allocation5 + $0x158] sm:$0xff] }
  0x37   :  { %961 = vmatpush3.msra.mxu0 %v78_v12  ;;  %1014 = vmatprep.subr.mxu1 %v261_v21  ;;  %v445_v53 = vld [vmem:[#allocation5 + $0x150] sm:$0xff]  ;;  %v444_v54 = vld [vmem:[#allocation5 + $0x148] sm:$0xff]  ;;  %v443_v55 = vld [vmem:[#allocation5 + $0x140] sm:$0xff] }
  0x38   :  { %962 = vmatprep.subr.mxu0 %v77_v14  ;;  %1015 = vmatpush3.msra.mxu1 %v261_v21  ;;  %v442_v56 = vld [vmem:[#allocation5 + $0x138] sm:$0xff]  ;;  %v441_v57 = vld [vmem:[#allocation5 + $0x130] sm:$0xff]  ;;  %v440_v58 = vld [vmem:[#allocation5 + $0x128] sm:$0xff] }
  0x39   :  { %963 = vmatpush3.msra.mxu0 %v77_v14  ;;  %1016 = vmatprep.subr.mxu1 %v260_v23  ;;  %v439_v59 = vld [vmem:[#allocation5 + $0x120] sm:$0xff]  ;;  %v438_v60 = vld [vmem:[#allocation5 + $0x118] sm:$0xff] }
  0x3a   :  { %964 = vmatprep.subr.mxu0 %v76_v16  ;;  %1017 = vmatpush3.msra.mxu1 %v260_v23  ;;  %v1304_v0 = vld [vmem:[#allocation7] sm:$0xf]  ;;  %v624_v61 = vld [vmem:[#allocation5 + $0x1b8] sm:$0xff] }
  0x3b   :  { %965 = vmatpush3.msra.mxu0 %v76_v16  ;;  %1018 = vmatprep.subr.mxu1 %v259_v25  ;;  %v90_v1 = vrot.slane %v1304_v0, %v89_v63  ;;  %v623_v63 = vld [vmem:[#allocation5 + $0x1b0] sm:$0xff] }
  0x3c   :  { %966 = vmatprep.subr.mxu0 %v75_v18  ;;  %1019 = vmatpush3.msra.mxu1 %v259_v25 }
  0x3d   :  { %967 = vmatpush3.msra.mxu0 %v75_v18  ;;  %1020 = vmatprep.subr.mxu1 %v258_v27 }
  0x3e   :  { %968 = vmatprep.subr.mxu0 %v74_v20  ;;  %1021 = vmatpush3.msra.mxu1 %v258_v27 }
  0x3f   :  { %969 = vmatpush3.msra.mxu0 %v74_v20  ;;  %1022 = vmatprep.subr.mxu1 %v257_v29 }
  0x40   :  { %970 = vmatprep.subr.mxu0 %v73_v22  ;;  %1023 = vmatpush3.msra.mxu1 %v257_v29 }
  0x41   :  { %971 = vmatpush3.msra.mxu0 %v73_v22  ;;  %1024 = vmatprep.subr.mxu1 %v256_v44 }
  0x42   :  { %972 = vmatprep.subr.mxu0 %v72_v24  ;;  %1025 = vmatpush3.msra.mxu1 %v256_v44 }
  0x43   :  { %973 = vmatpush3.msra.mxu0 %v72_v24  ;;  %1026 = vmatprep.subr.mxu1 %v255_v45 }
  0x44   :  { %974 = vmatprep.subr.mxu0 %v71_v26  ;;  %1027 = vmatpush3.msra.mxu1 %v255_v45 }
  0x45   :  { %975 = vmatpush3.msra.mxu0 %v71_v26  ;;  %1028 = vmatprep.subr.mxu1 %v254_v46 }
  0x46   :  { %977 = vmatmul.mubr.f32.vlgmr.msra.gmra.mxu0 %v56_v28  ;;  %1029 = vmatpush3.msra.mxu1 %v254_v46 }
  0x47   :  { %979 = vmatprep.mubr.f32.mxu0 %v57_v30  ;;  %1030 = vmatprep.subr.mxu1 %v253_v47 }
  0x48   :  { %1031 = vmatpush3.msra.mxu1 %v253_v47  ;;  %1056 = vmatprep.subr.mxu0 %v450_v48 }
  0x49   :  { %1057 = vmatpush3.msra.mxu0 %v450_v48 }
  0x4a   :  { %980 = vmatmul.mubr.f32.gmra.mxu0 %v58_v31  ;;  %1058 = vmatprep.subr.mxu0 %v449_v49 }
  0x4b   :  { %982 = vmatprep.mubr.f32.mxu0 %v59_v32  ;;  %1059 = vmatpush3.msra.mxu0 %v449_v49 }
  0x4c   :  { %1060 = vmatprep.subr.mxu0 %v448_v50 }
  0x4d   :  { %1061 = vmatpush3.msra.mxu0 %v448_v50  ;;  %v437_v50 = vld [vmem:[#allocation5 + $0x110] sm:$0xff] }
  0x4e   :  { %983 = vmatmul.mubr.f32.gmra.mxu0 %v60_v33  ;;  %1062 = vmatprep.subr.mxu0 %v447_v51 }
  0x4f   :  { %985 = vmatprep.mubr.f32.mxu0 %v61_v34  ;;  %1063 = vmatpush3.msra.mxu0 %v447_v51  ;;  %v436_v51 = vld [vmem:[#allocation5 + $0x108] sm:$0xff] }
  0x50   :  { %1064 = vmatprep.subr.mxu0 %v446_v52 }
  0x51   :  { %1065 = vmatpush3.msra.mxu0 %v446_v52  ;;  %v435_v52 = vld [vmem:[#allocation5 + $0x100] sm:$0xff] }
  0x52   :  { %986 = vmatmul.mubr.f32.gmra.mxu0 %v62_v35  ;;  %1066 = vmatprep.subr.mxu0 %v445_v53 }
  0x53   :  { %988 = vmatprep.mubr.f32.mxu0 %v63_v36  ;;  %1067 = vmatpush3.msra.mxu0 %v445_v53  ;;  %v632_v53 = vld [vmem:[#allocation5 + $0x1f8] sm:$0xff] }
  0x54   :  { %1068 = vmatprep.subr.mxu0 %v444_v54  ;;  %1112 = vmatprep.subr.mxu1 %v632_v53 }
  0x55   :  { %1069 = vmatpush3.msra.mxu0 %v444_v54  ;;  %v631_v54 = vld [vmem:[#allocation5 + $0x1f0] sm:$0xff] }
  0x56   :  { %989 = vmatmul.mubr.f32.gmra.mxu0 %v64_v37  ;;  %1070 = vmatprep.subr.mxu0 %v443_v55 }
  0x57   :  { %991 = vmatprep.mubr.f32.mxu0 %v65_v38  ;;  %1071 = vmatpush3.msra.mxu0 %v443_v55  ;;  %v630_v55 = vld [vmem:[#allocation5 + $0x1e8] sm:$0xff] }
  0x58   :  { %1072 = vmatprep.subr.mxu0 %v442_v56 }
  0x59   :  { %1073 = vmatpush3.msra.mxu0 %v442_v56  ;;  %v629_v56 = vld [vmem:[#allocation5 + $0x1e0] sm:$0xff] }
  0x5a   :  { %992 = vmatmul.mubr.f32.gmra.mxu0 %v66_v39  ;;  %1074 = vmatprep.subr.mxu0 %v441_v57 }
  0x5b   :  { %994 = vmatprep.mubr.f32.mxu0 %v67_v40  ;;  %1075 = vmatpush3.msra.mxu0 %v441_v57  ;;  %v628_v57 = vld [vmem:[#allocation5 + $0x1d8] sm:$0xff] }
  0x5c   :  { %1076 = vmatprep.subr.mxu0 %v440_v58 }
  0x5d   :  { %1077 = vmatpush3.msra.mxu0 %v440_v58  ;;  %v627_v58 = vld [vmem:[#allocation5 + $0x1d0] sm:$0xff] }
  0x5e   :  { %995 = vmatmul.mubr.f32.gmra.mxu0 %v68_v41  ;;  %1078 = vmatprep.subr.mxu0 %v439_v59 }
  0x5f   :  { %997 = vmatprep.mubr.f32.mxu0 %v69_v42  ;;  %1079 = vmatpush3.msra.mxu0 %v439_v59  ;;  %v626_v59 = vld [vmem:[#allocation5 + $0x1c8] sm:$0xff] }
  0x60   :  { %1080 = vmatprep.subr.mxu0 %v438_v60 }
  0x61   :  { %1081 = vmatpush3.msra.mxu0 %v438_v60  ;;  %v625_v60 = vld [vmem:[#allocation5 + $0x1c0] sm:$0xff] }
  0x62   :  { %998 = vmatmul.mubr.f32.gmra.mxu0 %v70_v43  ;;  %1082 = vmatprep.subr.mxu0 %v437_v50 }
  0x63   :  { %1083 = vmatpush3.msra.mxu0 %v437_v50 }
  0x64   :  { %1084 = vmatprep.subr.mxu0 %v436_v51 }
  0x65   :  { %1085 = vmatpush3.msra.mxu0 %v436_v51 }
  0x66   :  { %1086 = vmatprep.subr.mxu0 %v435_v52 }
  0x67   :  { %1087 = vmatpush3.msra.mxu0 %v435_v52 }
 0x106   :  { %v978_v2 = vpop.f32.mrf.mxu0 }
 0x107   :  { %v163_v3 = vadd.f32 %v978_v2, %v90_v1  ;;  %v621_v2 = vld [vmem:[#allocation5 + $0x1a0] sm:$0xff] }
 0x108   :  { %v157_v4 = vpop.f32.mrf.mxu0 }
 0x109   :  { %v158_v5 = vadd.f32 %v157_v4, %v90_v1  ;;  %v237_v8 = vmax.f32 %v163_v3, 0.0  ;;  %v620_v3 = vld [vmem:[#allocation5 + $0x198] sm:$0xff]  ;;  %v271_v4 = vsub.s32 1, %v1301_v62 }
 0x10a   :  { %v981_v6 = vpop.f32.mrf.mxu0 }
 0x10b   :  { %v236_v7 = vmax.f32 %v158_v5, 0.0  ;;  %v173_v9 = vadd.f32 %v981_v6, %v90_v1  ;;  %v272_v5 = vrot.slane %v1304_v0, %v271_v4 }
 0x10c   :  { %v167_v10 = vpop.f32.mrf.mxu0 }
 0x10d   :  { %v168_v11 = vadd.f32 %v167_v10, %v90_v1  ;;  %1032 = vmatprep.mubr.f32.mxu1 %v236_v7  ;;  %v239_v14 = vmax.f32 %v173_v9, 0.0 }
 0x10e   :  { %v984_v12 = vpop.f32.mrf.mxu0  ;;  %1033 = vmatmul.mubr.f32.vlgmr.msra.gmra.mxu1 %v237_v8 }
 0x10f   :  { %v238_v13 = vmax.f32 %v168_v11, 0.0  ;;  %v183_v15 = vadd.f32 %v984_v12, %v90_v1  ;;  %1113 = vmatpush3.msra.mxu1 %v632_v53 }
 0x110   :  { %v177_v16 = vpop.f32.mrf.mxu0  ;;  %1114 = vmatprep.subr.mxu1 %v631_v54 }
 0x111   :  { %v178_v17 = vadd.f32 %v177_v16, %v90_v1  ;;  %1035 = vmatprep.mubr.f32.mxu1 %v238_v13  ;;  %v241_v20 = vmax.f32 %v183_v15, 0.0  ;;  %1115 = vmatpush3.msra.mxu1 %v631_v54  ;;  %v619_v54 = vld [vmem:[#allocation5 + $0x190] sm:$0xff] }
 0x112   :  { %v987_v18 = vpop.f32.mrf.mxu0  ;;  %1036 = vmatmul.mubr.f32.gmra.mxu1 %v239_v14  ;;  %1116 = vmatprep.subr.mxu1 %v630_v55 }
 0x113   :  { %v240_v19 = vmax.f32 %v178_v17, 0.0  ;;  %v193_v21 = vadd.f32 %v987_v18, %v90_v1  ;;  %1117 = vmatpush3.msra.mxu1 %v630_v55  ;;  %v618_v55 = vld [vmem:[#allocation5 + $0x188] sm:$0xff] }
 0x114   :  { %v187_v22 = vpop.f32.mrf.mxu0  ;;  %1118 = vmatprep.subr.mxu1 %v629_v56 }
 0x115   :  { %v188_v23 = vadd.f32 %v187_v22, %v90_v1  ;;  %1038 = vmatprep.mubr.f32.mxu1 %v240_v19  ;;  %v243_v26 = vmax.f32 %v193_v21, 0.0  ;;  %1119 = vmatpush3.msra.mxu1 %v629_v56  ;;  %v617_v56 = vld [vmem:[#allocation5 + $0x180] sm:$0xff] }
 0x116   :  { %v990_v24 = vpop.f32.mrf.mxu0  ;;  %1039 = vmatmul.mubr.f32.gmra.mxu1 %v241_v20  ;;  %1120 = vmatprep.subr.mxu1 %v628_v57 }
 0x117   :  { %v242_v25 = vmax.f32 %v188_v23, 0.0  ;;  %v203_v27 = vadd.f32 %v990_v24, %v90_v1  ;;  %1121 = vmatpush3.msra.mxu1 %v628_v57  ;;  %v453_v57 = vsub.s32 2, %v1301_v62 }
 0x118   :  { %v197_v28 = vpop.f32.mrf.mxu0  ;;  %1122 = vmatprep.subr.mxu1 %v627_v58 }
 0x119   :  { %v198_v29 = vadd.f32 %v197_v28, %v90_v1  ;;  %1041 = vmatprep.mubr.f32.mxu1 %v242_v25  ;;  %v245_v32 = vmax.f32 %v203_v27, 0.0  ;;  %1123 = vmatpush3.msra.mxu1 %v627_v58  ;;  %v454_v58 = vrot.slane %v1304_v0, %v453_v57 }
 0x11a   :  { %v993_v30 = vpop.f32.mrf.mxu0  ;;  %1042 = vmatmul.mubr.f32.gmra.mxu1 %v243_v26  ;;  %1124 = vmatprep.subr.mxu1 %v626_v59 }
 0x11b   :  { %v244_v31 = vmax.f32 %v198_v29, 0.0  ;;  %v213_v33 = vadd.f32 %v993_v30, %v90_v1  ;;  %1125 = vmatpush3.msra.mxu1 %v626_v59 }
 0x11c   :  { %v207_v34 = vpop.f32.mrf.mxu0  ;;  %1126 = vmatprep.subr.mxu1 %v625_v60 }
 0x11d   :  { %v208_v35 = vadd.f32 %v207_v34, %v90_v1  ;;  %1044 = vmatprep.mubr.f32.mxu1 %v244_v31  ;;  %v247_v38 = vmax.f32 %v213_v33, 0.0  ;;  %1127 = vmatpush3.msra.mxu1 %v625_v60 }
 0x11e   :  { %v996_v36 = vpop.f32.mrf.mxu0  ;;  %1045 = vmatmul.mubr.f32.gmra.mxu1 %v245_v32  ;;  %1128 = vmatprep.subr.mxu1 %v624_v61 }
 0x11f   :  { %v246_v37 = vmax.f32 %v208_v35, 0.0  ;;  %v223_v39 = vadd.f32 %v996_v36, %v90_v1  ;;  %1129 = vmatpush3.msra.mxu1 %v624_v61 }
 0x120   :  { %v217_v40 = vpop.f32.mrf.mxu0  ;;  %1130 = vmatprep.subr.mxu1 %v623_v63 }
 0x121   :  { %v218_v41 = vadd.f32 %v217_v40, %v90_v1  ;;  %1047 = vmatprep.mubr.f32.mxu1 %v246_v37  ;;  %v249_v44 = vmax.f32 %v223_v39, 0.0  ;;  %1131 = vmatpush3.msra.mxu1 %v623_v63 }
 0x122   :  { %v999_v42 = vpop.f32.mrf.mxu0  ;;  %1048 = vmatmul.mubr.f32.gmra.mxu1 %v247_v38 }
 0x123   :  { %v248_v43 = vmax.f32 %v218_v41, 0.0  ;;  %v233_v45 = vadd.f32 %v999_v42, %v90_v1 }
 0x124   :  { %v227_v46 = vpop.f32.mrf.mxu0 }
 0x125   :  { %v228_v47 = vadd.f32 %v227_v46, %v90_v1  ;;  %1050 = vmatprep.mubr.f32.mxu1 %v248_v43  ;;  %v251_v49 = vmax.f32 %v233_v45, 0.0  ;;  %v622_v1 = vld [vmem:[#allocation5 + $0x1a8] sm:$0xff] }
 0x126   :  { %1051 = vmatmul.mubr.f32.gmra.mxu1 %v249_v44  ;;  %1132 = vmatprep.subr.mxu1 %v622_v1 }
 0x127   :  { %v250_v48 = vmax.f32 %v228_v47, 0.0  ;;  %1133 = vmatpush3.msra.mxu1 %v622_v1 }
 0x128   :  { %1134 = vmatprep.subr.mxu1 %v621_v2 }
 0x129   :  { %1053 = vmatprep.mubr.f32.mxu1 %v250_v48  ;;  %1135 = vmatpush3.msra.mxu1 %v621_v2 }
 0x12a   :  { %1054 = vmatmul.mubr.f32.gmra.mxu1 %v251_v49  ;;  %1136 = vmatprep.subr.mxu1 %v620_v3 }
 0x12b   :  { %1137 = vmatpush3.msra.mxu1 %v620_v3 }
 0x12c   :  { %1138 = vmatprep.subr.mxu1 %v619_v54 }
 0x12d   :  { %1139 = vmatpush3.msra.mxu1 %v619_v54 }
 0x12e   :  { %1140 = vmatprep.subr.mxu1 %v618_v55 }
 0x12f   :  { %1141 = vmatpush3.msra.mxu1 %v618_v55 }
 0x130   :  { %1142 = vmatprep.subr.mxu1 %v617_v56 }
 0x131   :  { %1143 = vmatpush3.msra.mxu1 %v617_v56 }
 0x1ce   :  { %v1034_v6 = vpop.f32.mrf.mxu1 }
 0x1cf   :  { %v345_v7 = vadd.f32 %v1034_v6, %v272_v5 }
 0x1d0   :  { %v339_v8 = vpop.f32.mrf.mxu1 }
 0x1d1   :  { %v340_v9 = vadd.f32 %v339_v8, %v272_v5  ;;  %v419_v12 = vmax.f32 %v345_v7, 0.0 }
 0x1d2   :  { %v1037_v10 = vpop.f32.mrf.mxu1 }
 0x1d3   :  { %v418_v11 = vmax.f32 %v340_v9, 0.0  ;;  %v355_v13 = vadd.f32 %v1037_v10, %v272_v5 }
 0x1d4   :  { %v349_v14 = vpop.f32.mrf.mxu1 }
 0x1d5   :  { %v350_v15 = vadd.f32 %v349_v14, %v272_v5  ;;  %1088 = vmatprep.mubr.f32.mxu0 %v418_v11  ;;  %v421_v18 = vmax.f32 %v355_v13, 0.0 }
 0x1d6   :  { %v1040_v16 = vpop.f32.mrf.mxu1  ;;  %1089 = vmatmul.mubr.f32.vlgmr.msra.gmra.mxu0 %v419_v12 }
 0x1d7   :  { %v420_v17 = vmax.f32 %v350_v15, 0.0  ;;  %v365_v19 = vadd.f32 %v1040_v16, %v272_v5 }
 0x1d8   :  { %v359_v20 = vpop.f32.mrf.mxu1 }
 0x1d9   :  { %v360_v21 = vadd.f32 %v359_v20, %v272_v5  ;;  %1091 = vmatprep.mubr.f32.mxu0 %v420_v17  ;;  %v423_v24 = vmax.f32 %v365_v19, 0.0 }
 0x1da   :  { %v1043_v22 = vpop.f32.mrf.mxu1  ;;  %1092 = vmatmul.mubr.f32.gmra.mxu0 %v421_v18 }
 0x1db   :  { %v422_v23 = vmax.f32 %v360_v21, 0.0  ;;  %v375_v25 = vadd.f32 %v1043_v22, %v272_v5 }
 0x1dc   :  { %v369_v26 = vpop.f32.mrf.mxu1 }
 0x1dd   :  { %v370_v27 = vadd.f32 %v369_v26, %v272_v5  ;;  %1094 = vmatprep.mubr.f32.mxu0 %v422_v23  ;;  %v425_v30 = vmax.f32 %v375_v25, 0.0 }
 0x1de   :  { %v1046_v28 = vpop.f32.mrf.mxu1  ;;  %1095 = vmatmul.mubr.f32.gmra.mxu0 %v423_v24 }
 0x1df   :  { %v424_v29 = vmax.f32 %v370_v27, 0.0  ;;  %v385_v31 = vadd.f32 %v1046_v28, %v272_v5 }
 0x1e0   :  { %v379_v32 = vpop.f32.mrf.mxu1 }
 0x1e1   :  { %v380_v33 = vadd.f32 %v379_v32, %v272_v5  ;;  %1097 = vmatprep.mubr.f32.mxu0 %v424_v29  ;;  %v427_v36 = vmax.f32 %v385_v31, 0.0 }
 0x1e2   :  { %v1049_v34 = vpop.f32.mrf.mxu1  ;;  %1098 = vmatmul.mubr.f32.gmra.mxu0 %v425_v30 }
 0x1e3   :  { %v426_v35 = vmax.f32 %v380_v33, 0.0  ;;  %v395_v37 = vadd.f32 %v1049_v34, %v272_v5 }
 0x1e4   :  { %v389_v38 = vpop.f32.mrf.mxu1 }
 0x1e5   :  { %v390_v39 = vadd.f32 %v389_v38, %v272_v5  ;;  %1100 = vmatprep.mubr.f32.mxu0 %v426_v35  ;;  %v429_v42 = vmax.f32 %v395_v37, 0.0 }
 0x1e6   :  { %v1052_v40 = vpop.f32.mrf.mxu1  ;;  %1101 = vmatmul.mubr.f32.gmra.mxu0 %v427_v36 }
 0x1e7   :  { %v428_v41 = vmax.f32 %v390_v39, 0.0  ;;  %v405_v43 = vadd.f32 %v1052_v40, %v272_v5 }
 0x1e8   :  { %v399_v44 = vpop.f32.mrf.mxu1 }
 0x1e9   :  { %v400_v45 = vadd.f32 %v399_v44, %v272_v5  ;;  %1103 = vmatprep.mubr.f32.mxu0 %v428_v41  ;;  %v431_v48 = vmax.f32 %v405_v43, 0.0 }
 0x1ea   :  { %v1055_v46 = vpop.f32.mrf.mxu1  ;;  %1104 = vmatmul.mubr.f32.gmra.mxu0 %v429_v42 }
 0x1eb   :  { %v430_v47 = vmax.f32 %v400_v45, 0.0  ;;  %v415_v49 = vadd.f32 %v1055_v46, %v272_v5  ;;  %v635_v45 = vsub.s32 3, %v1301_v62 }
 0x1ec   :  { %v409_v50 = vpop.f32.mrf.mxu1 }
 0x1ed   :  { %v410_v51 = vadd.f32 %v409_v50, %v272_v5  ;;  %1106 = vmatprep.mubr.f32.mxu0 %v430_v47  ;;  %v433_v53 = vmax.f32 %v415_v49, 0.0  ;;  %v636_v46 = vrot.slane %v1304_v0, %v635_v45 }
 0x1ee   :  { %1107 = vmatmul.mubr.f32.gmra.mxu0 %v431_v48 }
 0x1ef   :  { %v432_v52 = vmax.f32 %v410_v51, 0.0 }
 0x1f1   :  { %1109 = vmatprep.mubr.f32.mxu0 %v432_v52 }
 0x1f2   :  { %1110 = vmatmul.mubr.f32.gmra.mxu0 %v433_v53 }
 0x296   :  { %v1090_v59 = vpop.f32.mrf.mxu0 }
 0x297   :  { %v527_v60 = vadd.f32 %v1090_v59, %v454_v58 }
 0x298   :  { %v521_v61 = vpop.f32.mrf.mxu0 }
 0x299   :  { %v522_v63 = vadd.f32 %v521_v61, %v454_v58  ;;  %v601_v3 = vmax.f32 %v527_v60, 0.0 }
 0x29a   :  { %v1093_v1 = vpop.f32.mrf.mxu0 }
 0x29b   :  { %v600_v2 = vmax.f32 %v522_v63, 0.0  ;;  %v537_v4 = vadd.f32 %v1093_v1, %v454_v58 }
 0x29c   :  { %v531_v5 = vpop.f32.mrf.mxu0 }
 0x29d   :  { %v532_v6 = vadd.f32 %v531_v5, %v454_v58  ;;  %1144 = vmatprep.mubr.f32.mxu1 %v600_v2  ;;  %v603_v9 = vmax.f32 %v537_v4, 0.0 }
 0x29e   :  { %v1096_v7 = vpop.f32.mrf.mxu0  ;;  %1145 = vmatmul.mubr.f32.vlgmr.msra.gmra.mxu1 %v601_v3 }
 0x29f   :  { %v602_v8 = vmax.f32 %v532_v6, 0.0  ;;  %v547_v10 = vadd.f32 %v1096_v7, %v454_v58 }
 0x2a0   :  { %v541_v11 = vpop.f32.mrf.mxu0 }
 0x2a1   :  { %v542_v12 = vadd.f32 %v541_v11, %v454_v58  ;;  %1147 = vmatprep.mubr.f32.mxu1 %v602_v8  ;;  %v605_v15 = vmax.f32 %v547_v10, 0.0 }
 0x2a2   :  { %v1099_v13 = vpop.f32.mrf.mxu0  ;;  %1148 = vmatmul.mubr.f32.gmra.mxu1 %v603_v9 }
 0x2a3   :  { %v604_v14 = vmax.f32 %v542_v12, 0.0  ;;  %v557_v16 = vadd.f32 %v1099_v13, %v454_v58 }
 0x2a4   :  { %v551_v17 = vpop.f32.mrf.mxu0 }
 0x2a5   :  { %v552_v18 = vadd.f32 %v551_v17, %v454_v58  ;;  %1150 = vmatprep.mubr.f32.mxu1 %v604_v14  ;;  %v607_v21 = vmax.f32 %v557_v16, 0.0 }
 0x2a6   :  { %v1102_v19 = vpop.f32.mrf.mxu0  ;;  %1151 = vmatmul.mubr.f32.gmra.mxu1 %v605_v15 }
 0x2a7   :  { %v606_v20 = vmax.f32 %v552_v18, 0.0  ;;  %v567_v22 = vadd.f32 %v1102_v19, %v454_v58 }
 0x2a8   :  { %v561_v23 = vpop.f32.mrf.mxu0 }
 0x2a9   :  { %v562_v24 = vadd.f32 %v561_v23, %v454_v58  ;;  %1153 = vmatprep.mubr.f32.mxu1 %v606_v20  ;;  %v609_v27 = vmax.f32 %v567_v22, 0.0 }
 0x2aa   :  { %v1105_v25 = vpop.f32.mrf.mxu0  ;;  %1154 = vmatmul.mubr.f32.gmra.mxu1 %v607_v21 }
 0x2ab   :  { %v608_v26 = vmax.f32 %v562_v24, 0.0  ;;  %v577_v28 = vadd.f32 %v1105_v25, %v454_v58 }
 0x2ac   :  { %v571_v29 = vpop.f32.mrf.mxu0 }
 0x2ad   :  { %v572_v30 = vadd.f32 %v571_v29, %v454_v58  ;;  %1156 = vmatprep.mubr.f32.mxu1 %v608_v26  ;;  %v611_v33 = vmax.f32 %v577_v28, 0.0 }
 0x2ae   :  { %v1108_v31 = vpop.f32.mrf.mxu0  ;;  %1157 = vmatmul.mubr.f32.gmra.mxu1 %v609_v27 }
 0x2af   :  { %v610_v32 = vmax.f32 %v572_v30, 0.0  ;;  %v587_v34 = vadd.f32 %v1108_v31, %v454_v58 }
 0x2b0   :  { %v581_v35 = vpop.f32.mrf.mxu0 }
 0x2b1   :  { %v582_v36 = vadd.f32 %v581_v35, %v454_v58  ;;  %1159 = vmatprep.mubr.f32.mxu1 %v610_v32  ;;  %v613_v39 = vmax.f32 %v587_v34, 0.0 }
 0x2b2   :  { %v1111_v37 = vpop.f32.mrf.mxu0  ;;  %1160 = vmatmul.mubr.f32.gmra.mxu1 %v611_v33 }
 0x2b3   :  { %v612_v38 = vmax.f32 %v582_v36, 0.0  ;;  %v597_v40 = vadd.f32 %v1111_v37, %v454_v58 }
 0x2b4   :  { %v591_v41 = vpop.f32.mrf.mxu0 }
 0x2b5   :  { %v592_v42 = vadd.f32 %v591_v41, %v454_v58  ;;  %1162 = vmatprep.mubr.f32.mxu1 %v612_v38  ;;  %v615_v44 = vmax.f32 %v597_v40, 0.0 }
 0x2b6   :  { %1163 = vmatmul.mubr.f32.gmra.mxu1 %v613_v39 }
 0x2b7   :  { %v614_v43 = vmax.f32 %v592_v42, 0.0 }
 0x2b9   :  { %1165 = vmatprep.mubr.f32.mxu1 %v614_v43 }
 0x2ba   :  { %1166 = vmatmul.mubr.f32.gmra.mxu1 %v615_v44 }
 0x35e   :  { %v1146_v47 = vpop.f32.mrf.mxu1 }
 0x35f   :  { %v709_v48 = vadd.f32 %v1146_v47, %v636_v46 }
 0x360   :  { %v703_v49 = vpop.f32.mrf.mxu1 }
 0x361   :  { %783 = vst [vmem:[#allocation8 + $0x8] sm:$0xff] %v709_v48  ;;  %v704_v50 = vadd.f32 %v703_v49, %v636_v46 }
 0x362   :  { %v1149_v51 = vpop.f32.mrf.mxu1 }
 0x363   :  { %782 = vst [vmem:[#allocation8] sm:$0xff] %v704_v50  ;;  %v719_v52 = vadd.f32 %v1149_v51, %v636_v46 }
 0x364   :  { %v713_v53 = vpop.f32.mrf.mxu1 }
 0x365   :  { %785 = vst [vmem:[#allocation8 + $0x18] sm:$0xff] %v719_v52  ;;  %v714_v54 = vadd.f32 %v713_v53, %v636_v46 }
 0x366   :  { %v1152_v55 = vpop.f32.mrf.mxu1 }
 0x367   :  { %784 = vst [vmem:[#allocation8 + $0x10] sm:$0xff] %v714_v54  ;;  %v729_v56 = vadd.f32 %v1152_v55, %v636_v46 }
 0x368   :  { %v723_v57 = vpop.f32.mrf.mxu1 }
 0x369   :  { %787 = vst [vmem:[#allocation8 + $0x28] sm:$0xff] %v729_v56  ;;  %v724_v58 = vadd.f32 %v723_v57, %v636_v46 }
 0x36a   :  { %v1155_v62 = vpop.f32.mrf.mxu1 }
 0x36b   :  { %786 = vst [vmem:[#allocation8 + $0x20] sm:$0xff] %v724_v58  ;;  %v739_v0 = vadd.f32 %v1155_v62, %v636_v46 }
 0x36c   :  { %v733_v59 = vpop.f32.mrf.mxu1 }
 0x36d   :  { %789 = vst [vmem:[#allocation8 + $0x38] sm:$0xff] %v739_v0  ;;  %v734_v60 = vadd.f32 %v733_v59, %v636_v46 }
 0x36e   :  { %v1158_v61 = vpop.f32.mrf.mxu1 }
 0x36f   :  { %788 = vst [vmem:[#allocation8 + $0x30] sm:$0xff] %v734_v60  ;;  %v749_v63 = vadd.f32 %v1158_v61, %v636_v46 }
 0x370   :  { %v743_v1 = vpop.f32.mrf.mxu1 }
 0x371   :  { %791 = vst [vmem:[#allocation8 + $0x48] sm:$0xff] %v749_v63  ;;  %v744_v2 = vadd.f32 %v743_v1, %v636_v46 }
 0x372   :  { %v1161_v3 = vpop.f32.mrf.mxu1 }
 0x373   :  { %790 = vst [vmem:[#allocation8 + $0x40] sm:$0xff] %v744_v2  ;;  %v759_v4 = vadd.f32 %v1161_v3, %v636_v46 }
 0x374   :  { %v753_v5 = vpop.f32.mrf.mxu1 }
 0x375   :  { %793 = vst [vmem:[#allocation8 + $0x58] sm:$0xff] %v759_v4  ;;  %v754_v6 = vadd.f32 %v753_v5, %v636_v46 }
 0x376   :  { %v1164_v7 = vpop.f32.mrf.mxu1 }
 0x377   :  { %792 = vst [vmem:[#allocation8 + $0x50] sm:$0xff] %v754_v6  ;;  %v769_v8 = vadd.f32 %v1164_v7, %v636_v46 }
 0x378   :  { %v763_v9 = vpop.f32.mrf.mxu1 }
 0x379   :  { %795 = vst [vmem:[#allocation8 + $0x68] sm:$0xff] %v769_v8  ;;  %v764_v10 = vadd.f32 %v763_v9, %v636_v46 }
 0x37a   :  { %v1167_v11 = vpop.f32.mrf.mxu1 }
 0x37b   :  { %794 = vst [vmem:[#allocation8 + $0x60] sm:$0xff] %v764_v10  ;;  %v779_v12 = vadd.f32 %v1167_v11, %v636_v46 }
 0x37c   :  { %v773_v13 = vpop.f32.mrf.mxu1 }
 0x37d   :  { %797 = vst [vmem:[#allocation8 + $0x78] sm:$0xff] %v779_v12  ;;  %v774_v14 = vadd.f32 %v773_v13, %v636_v46 }
 0x37f   :  { %796 = vst [vmem:[#allocation8 + $0x70] sm:$0xff] %v774_v14 }
 0x380   :  { %1245 = shalt.err (!%p1242_p5)
}
 0x381   :  { %809 = dma.vmem_to_hbm [thread:$0]  %s804_s2, 2048, %s1322_s3, [#allocation4], %s1262_s17, %s1262_s17, %s1263_s18  }
 0x382   :  { %1258 = dma.done.wait [#allocation4], 2048  }
 0x383   :  { %1259 = vsyncadd [#allocation4], 4294965248 }
 0x384   :  { %813 = vsyncpa [#allocation3], 1 }
 0x385   :  { %814 = vsyncpa [#allocation6], 1 }
 0x386   :  { %815 = vsyncpa [#allocation4], 1 }

</bundles_post_ra>
